<compile_context>
chip_gen: v6e
topology: v6e:2x2x1
jax: 0.10.0
libtpu: 0.0.40
codegen_flags: <defaults>
</compile_context>

<pallas_src>
import jax
import jax.numpy as jnp
from jax.experimental import pallas as pl
from jax.experimental.pallas import tpu as pltpu

LANE = 128
TILE_B_MAX = 16384   # batch rows (lanes) per grid step


def _round_up(a, b):
    return ((a + b - 1) // b) * b


def _spiralnet_kernel(x_ref, w1t_ref, b1_ref, w2t_ref, b2_ref, w3_ref, b3_ref,
                      o_ref):
    """Transposed (features on sublanes, batch on lanes) forward for one tile.

    x_ref  : (2,  TB)  input            w1t_ref: (16, 2)   b1_ref: (16, 1)
    o_ref  : (1,  TB)  output           w2t_ref: (16, 16)  b2_ref: (16, 1)
                                        w3_ref : (16, 1)   b3_ref: (1,  1)
    """
    x = x_ref[...]                                   # (2, TB)  f32
    w1t = w1t_ref[...]                               # (16, 2)  f32

    # Layer 1: K=2 -> two broadcast FMAs on the VPU, lane-dense (16, TB).
    h1 = w1t[:, 0:1] * x[0:1, :] + w1t[:, 1:2] * x[1:2, :] + b1_ref[...]
    h1 = jnp.maximum(h1, 0.0)                        # (16, TB)

    # Layer 2: MXU matmul, contraction on sublanes, batch on lanes so every
    # result vreg is 128/128 lanes useful.
    h2 = jnp.dot(w2t_ref[...], h1, preferred_element_type=jnp.float32)
    h2 = jnp.maximum(h2 + b2_ref[...], 0.0)          # (16, TB)

    # Layer 3: 16 -> 1 as elementwise multiply + sublane reduction (VPU/XLU).
    h3 = jnp.sum(h2 * w3_ref[...], axis=0, keepdims=True) + b3_ref[...]

    # Sigmoid on the EUP: exp + approximate reciprocal (frees the VALU slot).
    o_ref[...] = pl.reciprocal(1.0 + jnp.exp(-h3), approx=True)   # (1, TB)


@jax.jit
def spiralnet_forward(x, params):
    """x: (N, 2) float32 -> (N, 1) float32, matching SPIRALNet.forward."""
    w1, b1, w2, b2, w3, b3 = params
    n = x.shape[0]

    # Batch tiling on the lane axis: round N up to 128 lanes, pick the tile.
    n128 = _round_up(max(n, 1), LANE)
    tb = min(TILE_B_MAX, n128)
    if n128 >= 2 * LANE:
        # Keep at least 2 grid steps so both v7x TensorCores get work.
        tb = min(tb, _round_up((n128 + 1) // 2, LANE))
    n_pad = _round_up(n128, tb)
    grid = (n_pad // tb,)

    # Fused pad + transpose: (N, 2) -> (2, N_pad), batch on the lane axis.
    xp = jnp.pad(x.astype(jnp.float32).T, ((0, 0), (0, n_pad - n)))

    w1t = w1.astype(jnp.float32).T                   # (16, 2)
    b1c = b1.astype(jnp.float32).reshape(16, 1)      # (16, 1)
    w2t = w2.astype(jnp.float32).T                   # (16, 16)
    b2c = b2.astype(jnp.float32).reshape(16, 1)      # (16, 1)
    w3c = w3.astype(jnp.float32).reshape(16, 1)      # (16, 1)
    b3c = b3.astype(jnp.float32).reshape(1, 1)       # (1, 1)

    def const(shape):
        # Same (only) block on every grid step -> stays VMEM-resident.
        return pl.BlockSpec(shape, lambda i: (0, 0))

    out = pl.pallas_call(
        _spiralnet_kernel,
        out_shape=jax.ShapeDtypeStruct((1, n_pad), jnp.float32),
        grid_spec=pltpu.PrefetchScalarGridSpec(
            num_scalar_prefetch=0,
            grid=grid,
            in_specs=[
                pl.BlockSpec((2, tb), lambda i: (0, i)),   # x (batch on lanes)
                const((16, 2)),                            # W1^T
                const((16, 1)),                            # b1
                const((16, 16)),                           # W2^T
                const((16, 1)),                            # b2
                const((16, 1)),                            # W3
                const((1, 1)),                             # b3
            ],
            out_specs=pl.BlockSpec((1, tb), lambda i: (0, i)),
        ),
        compiler_params=pltpu.CompilerParams(
            dimension_semantics=("parallel",)),
    )(xp, w1t, b1c, w2t, b2c, w3c, b3c)

    return out[:, :n].T                               # (N, 1)


def init_params(key):
    """Deterministic init matching nn.Linear shapes (stored as (in, out))."""
    k1, k2, k3, k4, k5, k6 = jax.random.split(key, 6)

    def linear(kw, kb, fan_in, fan_out):
        bound = 1.0 / jnp.sqrt(jnp.float32(fan_in))
        w = jax.random.uniform(kw, (fan_in, fan_out), jnp.float32, -bound, bound)
        b = jax.random.uniform(kb, (fan_out,), jnp.float32, -bound, bound)
        return w, b

    w1, b1 = linear(k1, k2, 2, 16)
    w2, b2 = linear(k3, k4, 16, 16)
    w3, b3 = linear(k5, k6, 16, 1)
    return (w1, b1, w2, b2, w3, b3)


def reference_forward(x, params):
    w1, b1, w2, b2, w3, b3 = params
    h = jnp.maximum(x @ w1 + b1, 0.0)
    h = jnp.maximum(h @ w2 + b2, 0.0)
    return jax.nn.sigmoid(h @ w3 + b3)


if __name__ == "__main__":
    key = jax.random.PRNGKey(0)
    k_x, k_p, k_x2 = jax.random.split(key, 3)

    params = init_params(k_p)

    # Small test (single 128-lane tile, single grid step).
    batch = 8
    x = jax.random.normal(k_x, (batch, 2), jnp.float32)
    out = spiralnet_forward(x, params)
    jax.block_until_ready(out)
    ref = reference_forward(x, params)
    assert out.shape == (batch, 1), out.shape
    # 2e-3 tolerance: sigmoid uses the EUP approximate reciprocal.
    assert jnp.allclose(out, ref, atol=2e-3, rtol=2e-3), (
        float(jnp.max(jnp.abs(out - ref))))

    # Multi-tile test (exercises the 2-step parallel grid, pipelining and
    # the ragged lane padding).
    x2 = jax.random.normal(k_x2, (2500, 2), jnp.float32)
    out2 = spiralnet_forward(x2, params)
    jax.block_until_ready(out2)
    ref2 = reference_forward(x2, params)
    assert out2.shape == (2500, 1), out2.shape
    assert jnp.allclose(out2, ref2, atol=2e-3, rtol=2e-3), (
        float(jnp.max(jnp.abs(out2 - ref2))))

    print("KERNEL_OK")
</pallas_src>

<mosaic_0001>
module attributes {stable_mosaic.version = 11 : i64} {
  func.func @_spiralnet_kernel(%arg0: i32, %arg1: memref<2x128xf32, #tpu.memory_space<vmem>>, %arg2: memref<16x2xf32, #tpu.memory_space<vmem>>, %arg3: memref<16x1xf32, #tpu.memory_space<vmem>>, %arg4: memref<16x16xf32, #tpu.memory_space<vmem>>, %arg5: memref<16x1xf32, #tpu.memory_space<vmem>>, %arg6: memref<16x1xf32, #tpu.memory_space<vmem>>, %arg7: memref<1x1xf32, #tpu.memory_space<vmem>>, %arg8: memref<1x128xf32, #tpu.memory_space<vmem>>) attributes {dimension_semantics = [#tpu.dimension_semantics<parallel>], iteration_bounds = array<i64: 1>, scalar_prefetch = 0 : i64, scratch_operands = 0 : i64, tpu.core_type = #tpu.core_type<tc>, window_params = [{transform_indices = @transform_0, window_bounds = array<i64: 2, 128>}, {pipeline_mode = #tpu.pipeline_mode<synchronous>, transform_indices = @transform_1, window_bounds = array<i64: 16, 2>}, {pipeline_mode = #tpu.pipeline_mode<synchronous>, transform_indices = @transform_2, window_bounds = array<i64: 16, 1>}, {pipeline_mode = #tpu.pipeline_mode<synchronous>, transform_indices = @transform_3, window_bounds = array<i64: 16, 16>}, {pipeline_mode = #tpu.pipeline_mode<synchronous>, transform_indices = @transform_4, window_bounds = array<i64: 16, 1>}, {pipeline_mode = #tpu.pipeline_mode<synchronous>, transform_indices = @transform_5, window_bounds = array<i64: 16, 1>}, {pipeline_mode = #tpu.pipeline_mode<synchronous>, transform_indices = @transform_6, window_bounds = array<i64: 1, 1>}, {transform_indices = @transform_7, window_bounds = array<i64: 1, 128>}]} {
    %c0 = arith.constant 0 : index
    %c0_0 = arith.constant 0 : index
    %0 = vector.load %arg1[%c0, %c0_0] : memref<2x128xf32, #tpu.memory_space<vmem>>, vector<2x128xf32>
    %c0_1 = arith.constant 0 : index
    %c0_2 = arith.constant 0 : index
    %1 = vector.load %arg2[%c0_1, %c0_2] : memref<16x2xf32, #tpu.memory_space<vmem>>, vector<16x2xf32>
    %2 = vector.extract_strided_slice %1 {offsets = [0, 0], sizes = [16, 1], strides = [1, 1]} : vector<16x2xf32> to vector<16x1xf32>
    %3 = vector.extract_strided_slice %0 {offsets = [0, 0], sizes = [1, 128], strides = [1, 1]} : vector<2x128xf32> to vector<1x128xf32>
    %4 = vector.broadcast %2 : vector<16x1xf32> to vector<16x128xf32>
    %5 = vector.broadcast %3 : vector<1x128xf32> to vector<16x128xf32>
    %6 = arith.mulf %4, %5 : vector<16x128xf32>
    %7 = vector.extract_strided_slice %1 {offsets = [0, 1], sizes = [16, 1], strides = [1, 1]} : vector<16x2xf32> to vector<16x1xf32>
    %8 = vector.extract_strided_slice %0 {offsets = [1, 0], sizes = [1, 128], strides = [1, 1]} : vector<2x128xf32> to vector<1x128xf32>
    %9 = vector.broadcast %7 : vector<16x1xf32> to vector<16x128xf32>
    %10 = vector.broadcast %8 : vector<1x128xf32> to vector<16x128xf32>
    %11 = arith.mulf %9, %10 : vector<16x128xf32>
    %12 = arith.addf %6, %11 : vector<16x128xf32>
    %c0_3 = arith.constant 0 : index
    %c0_4 = arith.constant 0 : index
    %13 = vector.load %arg3[%c0_3, %c0_4] : memref<16x1xf32, #tpu.memory_space<vmem>>, vector<16x1xf32>
    %14 = vector.broadcast %13 : vector<16x1xf32> to vector<16x128xf32>
    %15 = arith.addf %12, %14 : vector<16x128xf32>
    %cst = arith.constant 0.000000e+00 : f32
    %16 = vector.broadcast %cst : f32 to vector<16x128xf32>
    %17 = arith.maximumf %15, %16 : vector<16x128xf32>
    %c0_5 = arith.constant 0 : index
    %c0_6 = arith.constant 0 : index
    %18 = vector.load %arg4[%c0_5, %c0_6] : memref<16x16xf32, #tpu.memory_space<vmem>>, vector<16x16xf32>
    %cst_7 = arith.constant dense<0.000000e+00> : vector<16x128xf32>
    %19 = tpu.matmul %18, %17, %cst_7 {dimension_numbers = #tpu.dot_dimension_numbers<[1], [0], [0], [1], [0, 0, 1, 1], [], []>} : vector<16x16xf32>, vector<16x128xf32>, vector<16x128xf32> -> vector<16x128xf32>
    %c0_8 = arith.constant 0 : index
    %c0_9 = arith.constant 0 : index
    %20 = vector.load %arg5[%c0_8, %c0_9] : memref<16x1xf32, #tpu.memory_space<vmem>>, vector<16x1xf32>
    %21 = vector.broadcast %20 : vector<16x1xf32> to vector<16x128xf32>
    %22 = arith.addf %19, %21 : vector<16x128xf32>
    %cst_10 = arith.constant 0.000000e+00 : f32
    %23 = vector.broadcast %cst_10 : f32 to vector<16x128xf32>
    %24 = arith.maximumf %22, %23 : vector<16x128xf32>
    %c0_11 = arith.constant 0 : index
    %c0_12 = arith.constant 0 : index
    %25 = vector.load %arg6[%c0_11, %c0_12] : memref<16x1xf32, #tpu.memory_space<vmem>>, vector<16x1xf32>
    %26 = vector.broadcast %25 : vector<16x1xf32> to vector<16x128xf32>
    %27 = arith.mulf %24, %26 : vector<16x128xf32>
    %cst_13 = arith.constant dense<0.000000e+00> : vector<128xf32>
    %28 = vector.multi_reduction <add>, %27, %cst_13 [0] : vector<16x128xf32> to vector<128xf32>
    %29 = vector.shape_cast %28 : vector<128xf32> to vector<1x128xf32>
    %c0_14 = arith.constant 0 : index
    %c0_15 = arith.constant 0 : index
    %30 = vector.load %arg7[%c0_14, %c0_15] : memref<1x1xf32, #tpu.memory_space<vmem>>, vector<1x1xf32>
    %31 = vector.broadcast %30 : vector<1x1xf32> to vector<1x128xf32>
    %32 = arith.addf %29, %31 : vector<1x128xf32>
    %cst_16 = arith.constant 0.000000e+00 : f32
    %33 = vector.broadcast %cst_16 : f32 to vector<1x128xf32>
    %34 = arith.subf %33, %32 : vector<1x128xf32>
    %35 = math.exp %34 : vector<1x128xf32>
    %cst_17 = arith.constant 1.000000e+00 : f32
    %36 = vector.broadcast %cst_17 : f32 to vector<1x128xf32>
    %37 = arith.addf %36, %35 : vector<1x128xf32>
    %38 = tpu.reciprocal %37 {approx = true} : vector<1x128xf32> -> vector<1x128xf32>
    %c0_18 = arith.constant 0 : index
    %c0_19 = arith.constant 0 : index
    %39 = vector.load %arg8[%c0_18, %c0_19] : memref<1x128xf32, #tpu.memory_space<vmem>>, vector<1x128xf32>
    tpu.vector_store %arg8[%c0_18, %c0_19], %38 {strides = array<i32>} : memref<1x128xf32, #tpu.memory_space<vmem>>, vector<1x128xf32>,
    return
  }
  func.func @transform_0(%arg0: i32) -> (i32, i32) {
    %c0_i32 = arith.constant 0 : i32
    %c0_i32_0 = arith.constant 0 : i32
    return %c0_i32, %arg0 : i32, i32
  }
  func.func @transform_1(%arg0: i32) -> (i32, i32) {
    %c0_i32 = arith.constant 0 : i32
    %c0_i32_0 = arith.constant 0 : i32
    %c0_i32_1 = arith.constant 0 : i32
    return %c0_i32, %c0_i32_0 : i32, i32
  }
  func.func @transform_2(%arg0: i32) -> (i32, i32) {
    %c0_i32 = arith.constant 0 : i32
    %c0_i32_0 = arith.constant 0 : i32
    %c0_i32_1 = arith.constant 0 : i32
    return %c0_i32, %c0_i32_0 : i32, i32
  }
  func.func @transform_3(%arg0: i32) -> (i32, i32) {
    %c0_i32 = arith.constant 0 : i32
    %c0_i32_0 = arith.constant 0 : i32
    %c0_i32_1 = arith.constant 0 : i32
    return %c0_i32, %c0_i32_0 : i32, i32
  }
  func.func @transform_4(%arg0: i32) -> (i32, i32) {
    %c0_i32 = arith.constant 0 : i32
    %c0_i32_0 = arith.constant 0 : i32
    %c0_i32_1 = arith.constant 0 : i32
    return %c0_i32, %c0_i32_0 : i32, i32
  }
  func.func @transform_5(%arg0: i32) -> (i32, i32) {
    %c0_i32 = arith.constant 0 : i32
    %c0_i32_0 = arith.constant 0 : i32
    %c0_i32_1 = arith.constant 0 : i32
    return %c0_i32, %c0_i32_0 : i32, i32
  }
  func.func @transform_6(%arg0: i32) -> (i32, i32) {
    %c0_i32 = arith.constant 0 : i32
    %c0_i32_0 = arith.constant 0 : i32
    %c0_i32_1 = arith.constant 0 : i32
    return %c0_i32, %c0_i32_0 : i32, i32
  }
  func.func @transform_7(%arg0: i32) -> (i32, i32) {
    %c0_i32 = arith.constant 0 : i32
    %c0_i32_0 = arith.constant 0 : i32
    return %c0_i32, %arg0 : i32, i32
  }
}

</mosaic_0001>

<bundles_post_ra>
// kernel: spiralnet_forward.1
= control target key start
LH: loop header
LB: loop body
LE: loop exit
PB: predicated region body
PF: predicated region fallthrough
CT: control target
= control target key end

     0   :  { %v244_v0 = vmov 0   ;;  %v245_v4 = vmov 1   ;;  %vm93_vm0 = vcmask 130048   ;;  %v41_v13 = vlaneseq  ;;  %s327_s1 = inlined_call_operand.vmem [shape: f32[16,2], index: 1, kind: input, shape index: {}]   ;;  %s328_s6 = inlined_call_operand.<no memory space> [shape: f32[1,1], index: 6, kind: input, shape index: {}]   ;;  %s329_s2 = inlined_call_operand.vmem [shape: f32[16,1], index: 2, kind: input, shape index: {}]   ;;  %s330_s5 = inlined_call_operand.vmem [shape: f32[16,1], index: 5, kind: input, shape index: {}]   ;;  %s331_s4 = inlined_call_operand.vmem [shape: f32[16,1], index: 4, kind: input, shape index: {}]   ;;  %s332_s3 = inlined_call_operand.vmem [shape: f32[16,16], index: 3, kind: input, shape index: {}]   ;;  %s333_s0 = inlined_call_operand.vmem [shape: f32[2,128], index: 0, kind: input, shape index: {}]   ;;  %s334_s7 = inlined_call_operand.vmem [shape: f32[1,128], index: 7, kind: output, shape index: {}]  }
   0x1   :  { %236 = vset.pattern.permute.xlu1 %v244_v0  ;;  %234 = vset.pattern.permute.xlu0 %v244_v0  ;;  %v30_v1 = vld [vmem:[%s327_s1 + $0x8] sm:$0xff]  ;;  %v29_v2 = vld [vmem:[%s327_s1] sm:$0xff]  ;;  %v12_v3 = vstv %s328_s6 }
   0x2   :  { %38 = vperm.xlu0 %234, %v30_v1   ;;  %33 = vperm.xlu1 %236, %v29_v2   ;;  %13 = vst [vmem:[#allocation2] sm:$0x1] %v12_v3  ;;  %v63_v5 = vld [vmem:[%s329_s2] sm:$0xff]  ;;  %v64_v6 = vld [vmem:[%s329_s2 + $0x8] sm:$0xff]  ;;  %v42_v14 = vshrl.u32 %v41_v13, 7 }
   0x3   :  { %v177_v7 = vld [vmem:[%s330_s5] sm:$0xff]  ;;  %v82_v11 = vld [vmem:[%s331_s4 + $0x8] sm:$0xff] }
   0x4   :  { %v81_v8 = vld [vmem:[%s331_s4] sm:$0xff]  ;;  %v178_v12 = vld [vmem:[%s330_s5 + $0x8] sm:$0xff]  ;;  %v43_v15 = vsub.s32 0, %v42_v14  ;;  %v57_v16 = vsub.s32 1, %v42_v14 }
   0x5   :  { %v79_v9 = vld [vmem:[%s332_s3] sm:$0xff]  ;;  %v80_v36 = vld [vmem:[%s332_s3 + $0x8] sm:$0xff] }
   0x6   :  { %235 = vset.pattern.permute.xlu0 %v245_v4  ;;  %237 = vset.pattern.permute.xlu1 %v245_v4  ;;  %v28_v17 = vld [vmem:[%s333_s0] sm:$0x3] }
   0x7   :  { %52 = vperm.xlu0 %235, %v30_v1   ;;  %48 = vperm.xlu1 %237, %v29_v2   ;;  %v44_v20 = vrot.slane %v28_v17, %v43_v15  ;;  %v58_v21 = vrot.slane %v28_v17, %v57_v16 }
   0x8   :  { %229 = vmatprep.mubr.msk.f32.mxu0 %vm93_vm0, %v79_v9 }
   0x9   :  { %v198_v10 = vld [vmem:[#allocation2] sm:$0x1] }
   0xb   :  { %239 = vset.pattern.permute.xlu0 %v244_v0  ;;  %238 = vset.pattern.permute.xlu1 %v244_v0 }
   0xc   :  { %67 = vperm.xlu0 %239, %v63_v5   ;;  %72 = vperm.xlu1 %238, %v64_v6  }
  0x10   :  { %181 = vperm.xlu0 %239, %v177_v7   ;;  %85 = vperm.xlu1 %238, %v81_v8  }
  0x14   :  { %201 = vperm.xlu0 %239, %v198_v10   ;;  %90 = vperm.xlu1 %238, %v82_v11  }
  0x18   :  { %186 = vperm.xlu1 %238, %v178_v12  }
  0x7d   :  { %v34_v18 = vpop.permute.xlu1 %33  ;;  %v39_v19 = vpop.permute.xlu0 %38 }
  0x7e   :  { %v45_v24 = vmul.f32 %v44_v20, %v34_v18  ;;  %v46_v25 = vmul.f32 %v44_v20, %v39_v19 }
  0x82   :  { %v53_v22 = vpop.permute.xlu0 %52  ;;  %v49_v23 = vpop.permute.xlu1 %48 }
  0x83   :  { %v60_v26 = vmul.f32 %v58_v21, %v53_v22  ;;  %v59_v27 = vmul.f32 %v58_v21, %v49_v23 }
  0x85   :  { %v61_v28 = vadd.f32 %v59_v27, %v45_v24  ;;  %v62_v29 = vadd.f32 %v60_v26, %v46_v25 }
  0x87   :  { %v68_v30 = vpop.permute.xlu0 %67  ;;  %v73_v31 = vpop.permute.xlu1 %72 }
  0x88   :  { %v75_v32 = vadd.f32 %v68_v30, %v61_v28  ;;  %v76_v33 = vadd.f32 %v73_v31, %v62_v29 }
  0x8a   :  { %v78_v34 = vmax.f32 %v76_v33, 0.0  ;;  %v77_v35 = vmax.f32 %v75_v32, 0.0 }
  0x8b   :  { %v86_v37 = vpop.permute.xlu1 %85  ;;  %v182_v45 = vpop.permute.xlu0 %181 }
  0x8c   :  { %225 = vmatprep.subr.mxu0 %v78_v34 }
  0x8d   :  { %226 = vmatpush3.msra.mxu0 %v78_v34 }
  0x8e   :  { %227 = vmatprep.subr.mxu0 %v77_v35 }
  0x8f   :  { %228 = vmatpush3.msra.mxu0 %v77_v35  ;;  %v91_v38 = vpop.permute.xlu1 %90  ;;  %v202_v54 = vpop.permute.xlu0 %201 }
  0x90   :  { %230 = vmatmul.mubr.msk.f32.vlgmr.msra.gmra.mxu0 %vm93_vm0, %v80_v36  ;;  %v207_v56 = vrot.slane %v202_v54, %v43_v15 }
  0x93   :  { %v187_v46 = vpop.permute.xlu1 %186 }
 0x150   :  { %v231_v39 = vpop.f32.mrf.mxu0 }
 0x151   :  { %v172_v40 = vadd.f32 %v231_v39, %v91_v38 }
 0x152   :  { %v166_v41 = vpop.f32.mrf.mxu0 }
 0x153   :  { %v176_v42 = vmax.f32 %v172_v40, 0.0  ;;  %v167_v43 = vadd.f32 %v166_v41, %v86_v37 }
 0x155   :  { %v175_v44 = vmax.f32 %v167_v43, 0.0  ;;  %v190_v47 = vmul.f32 %v187_v46, %v176_v42 }
 0x157   :  { %v189_v48 = vmul.f32 %v182_v45, %v175_v44 }
 0x159   :  { %v191_v49 = vadd.f32 %v190_v47, %v189_v48 }
 0x15b   :  { %v192_v50 = vrot.slane %v191_v49, 4 }
 0x15d   :  { %v193_v51 = vadd.f32 %v192_v50, %v191_v49 }
 0x15f   :  { %v194_v52 = vrot.slane %v193_v51, 2 }
 0x161   :  { %v195_v53 = vadd.f32 %v194_v52, %v193_v51 }
 0x163   :  { %v196_v55 = vrot.slane %v195_v53, 1 }
 0x165   :  { %v197_v57 = vadd.f32 %v196_v55, %v195_v53 }
 0x167   :  { %v208_v58 = vadd.f32 %v207_v56, %v197_v57 }
 0x169   :  { %v209_v59 = vsub.f32 0.0, %v208_v58 }
 0x16b   :  { %v210_v60 = vmul.f32 1.442695, %v209_v59 }
 0x16d   :  { %240 = vpow2.f32 %v210_v60 }
 0x17a   :  { %v241_v61 = vpop.eup %240 }
 0x17b   :  { %v212_v62 = vadd.f32 1.0, %v241_v61 }
 0x17d   :  { %242 = vrcp.f32 %v212_v62 }
 0x18a   :  { %v243_v63 = vpop.eup %242 }
 0x18b   :  { %214 = vst [vmem:[%s334_s7] sm:$0x1] %v243_v63 }

</bundles_post_ra>
